<compile_context>
chip_gen: v6e
topology: v6e:2x2x1
jax: 0.10.0
libtpu: 0.0.40
codegen_flags: <defaults>
</compile_context>

<pallas_src>
import jax
import jax.numpy as jnp
from jax import lax
from jax.experimental import pallas as pl
from jax.experimental.pallas import tpu as pltpu


def _round_up(x, m):
    return ((x + m - 1) // m) * m


# --------------------------------------------------------------------------
# Generic (M,K)@(K,N)+bias projection kernel -- used for the hoisted input
# projection and the deferred output projection (one big MXU-friendly matmul).
# --------------------------------------------------------------------------
def _proj_kernel(x_ref, w_ref, b_ref, o_ref):
    o_ref[...] = (
        jnp.dot(x_ref[...], w_ref[...], preferred_element_type=jnp.float32)
        + b_ref[...]
    ).astype(o_ref.dtype)


def _project(x2, w, b, *, block_m=512):
    """y = x2 @ w + b, tiled over rows.  x2: (M,K), w: (K,N), b: (1,N)."""
    M, K = x2.shape
    N = w.shape[1]
    tm = min(block_m, _round_up(M, 8))     # sublane-aligned row tile
    Mp = _round_up(M, tm)
    if Mp != M:
        x2 = jnp.pad(x2, ((0, Mp - M), (0, 0)))
    y = pl.pallas_call(
        _proj_kernel,
        out_shape=jax.ShapeDtypeStruct((Mp, N), jnp.float32),
        grid=(Mp // tm,),
        in_specs=[
            pl.BlockSpec((tm, K), lambda i: (i, 0)),
            pl.BlockSpec((K, N), lambda i: (0, 0)),
            pl.BlockSpec((1, N), lambda i: (0, 0)),
        ],
        out_specs=pl.BlockSpec((tm, N), lambda i: (i, 0)),
        compiler_params=pltpu.CompilerParams(
            dimension_semantics=("parallel",)),
    )(x2, w, b)
    return y[:M]


# --------------------------------------------------------------------------
# Serial LSTM recurrence: only h_prev @ W_hh stays on the critical path.
# --------------------------------------------------------------------------
def _lstm_recurrent_kernel(gx_ref, w_hh_ref, h_all_ref, h_sc, c_sc):
    # gx_ref:    (Tc, Bp, 4*Hp)  precomputed x@W_ih^T + (b_ih+b_hh), gates i,f,g,o
    # w_hh_ref:  (Hp, 4*Hp)      hidden->gates (transposed)
    # h_all_ref: (Tc, Bp, Hp)    all hidden states for this time chunk
    # h_sc/c_sc: (Bp, Hp)        recurrent state carried across grid steps
    @pl.when(pl.program_id(0) == 0)
    def _():
        h_sc[...] = jnp.zeros_like(h_sc)
        c_sc[...] = jnp.zeros_like(c_sc)

    Tc = gx_ref.shape[0]
    Hp = h_sc.shape[1]
    w_hh = w_hh_ref[...]                    # hoist weight load out of time loop

    def step(t, carry):
        h_prev, c_prev = carry
        gates = gx_ref[t] + jnp.dot(h_prev, w_hh,
                                    preferred_element_type=jnp.float32)
        # Hp is a multiple of 128 -> gate slices are lane-aligned vreg views.
        i_g = jax.nn.sigmoid(gates[:, 0 * Hp:1 * Hp])
        f_g = jax.nn.sigmoid(gates[:, 1 * Hp:2 * Hp])
        g_g = jnp.tanh(gates[:, 2 * Hp:3 * Hp])
        o_g = jax.nn.sigmoid(gates[:, 3 * Hp:4 * Hp])
        c_new = f_g * c_prev + i_g * g_g
        h_new = o_g * jnp.tanh(c_new)
        h_all_ref[t] = h_new.astype(h_all_ref.dtype)
        return h_new, c_new

    h_fin, c_fin = lax.fori_loop(0, Tc, step, (h_sc[...], c_sc[...]),
                                 unroll=True)
    h_sc[...] = h_fin
    c_sc[...] = c_fin


# --------------------------------------------------------------------------
# Host-side wrapper
# --------------------------------------------------------------------------
def rnn_forward(x, params, *, time_chunk=16):
    """x: (T, B, I) float32.  Returns (T, B, O) = Linear(LSTM(x, zeros)[0])."""
    T, B, I = x.shape
    H = params["w_hh"].shape[1]
    O = params["w_out"].shape[0]
    f32 = jnp.float32

    Bp = _round_up(B, 8)        # sublane alignment
    Hp = _round_up(H, 128)      # lane alignment -> free gate slices
    Tc = min(time_chunk, T)     # timesteps per grid step
    Tp = _round_up(T, Tc)

    # --- pad + transpose weights (PyTorch gate order i, f, g, o) ------------
    def pad_gate_rows(w):       # (4H, cols) -> (4Hp, cols), pad each gate block
        w4 = w.reshape(4, H, -1)
        return jnp.pad(w4, ((0, 0), (0, Hp - H), (0, 0))).reshape(4 * Hp, -1)

    w_ih_p = pad_gate_rows(params["w_ih"].astype(f32))                 # (4Hp, I)
    w_hh_p = pad_gate_rows(params["w_hh"].astype(f32))                 # (4Hp, H)
    w_hh_p = jnp.pad(w_hh_p, ((0, 0), (0, Hp - H)))                    # (4Hp, Hp)
    b_p = jnp.pad((params["b_ih"] + params["b_hh"]).astype(f32).reshape(4, H),
                  ((0, 0), (0, Hp - H))).reshape(1, 4 * Hp)            # (1, 4Hp)
    w_out_p = jnp.pad(params["w_out"].astype(f32), ((0, 0), (0, Hp - H)))  # (O, Hp)

    w_ih_t = w_ih_p.T            # (I, 4Hp)
    w_hh_t = w_hh_p.T            # (Hp, 4Hp)
    w_out_t = w_out_p.T          # (Hp, O)
    b_out = params["b_out"].astype(f32).reshape(1, O)

    # --- 1) hoisted input projection: one big matmul over all timesteps -----
    x_p = jnp.pad(x.astype(f32), ((0, 0), (0, Bp - B), (0, 0)))        # (T, Bp, I)
    gx = _project(x_p.reshape(T * Bp, I), w_ih_t, b_p)                 # (T*Bp, 4Hp)
    gx = gx.reshape(T, Bp, 4 * Hp)
    if Tp != T:
        gx = jnp.pad(gx, ((0, Tp - T), (0, 0), (0, 0)))                # (Tp, Bp, 4Hp)

    # --- 2) serial recurrence (chunked over time) ----------------------------
    h_all = pl.pallas_call(
        _lstm_recurrent_kernel,
        out_shape=jax.ShapeDtypeStruct((Tp, Bp, Hp), f32),
        grid_spec=pltpu.PrefetchScalarGridSpec(
            num_scalar_prefetch=0,
            grid=(Tp // Tc,),
            in_specs=[
                pl.BlockSpec((Tc, Bp, 4 * Hp), lambda t: (t, 0, 0)),   # gates_x chunk
                pl.BlockSpec((Hp, 4 * Hp), lambda t: (0, 0)),          # W_hh^T (const)
            ],
            out_specs=pl.BlockSpec((Tc, Bp, Hp), lambda t: (t, 0, 0)),
            scratch_shapes=[
                pltpu.VMEM((Bp, Hp), f32),   # h carried across chunks
                pltpu.VMEM((Bp, Hp), f32),   # c carried across chunks
            ],
        ),
        compiler_params=pltpu.CompilerParams(
            dimension_semantics=("arbitrary",)),   # time recurrence is serial
    )(gx, w_hh_t)

    # --- 3) deferred output projection: one big lane-dense matmul -----------
    y = _project(h_all.reshape(Tp * Bp, Hp), w_out_t, b_out)           # (Tp*Bp, O)
    y = y.reshape(Tp, Bp, O)[:T, :B]
    return y.astype(x.dtype)


# --------------------------------------------------------------------------
# Param init + pure-JAX reference (for the correctness check)
# --------------------------------------------------------------------------
def init_params(key, input_size, hidden_size, output_size):
    k = jax.random.split(key, 6)
    s_l = 1.0 / jnp.sqrt(hidden_size)
    return {
        "w_ih": jax.random.uniform(k[0], (4 * hidden_size, input_size),
                                   jnp.float32, -s_l, s_l),
        "w_hh": jax.random.uniform(k[1], (4 * hidden_size, hidden_size),
                                   jnp.float32, -s_l, s_l),
        "b_ih": jax.random.uniform(k[2], (4 * hidden_size,), jnp.float32, -s_l, s_l),
        "b_hh": jax.random.uniform(k[3], (4 * hidden_size,), jnp.float32, -s_l, s_l),
        "w_out": jax.random.uniform(k[4], (output_size, hidden_size),
                                    jnp.float32, -s_l, s_l),
        "b_out": jax.random.uniform(k[5], (output_size,), jnp.float32, -s_l, s_l),
    }


def reference_forward(x, params):
    """Pure-JAX reference of the same LSTM + Linear."""
    T, B, I = x.shape
    H = params["w_hh"].shape[1]
    h = jnp.zeros((B, H), jnp.float32)
    c = jnp.zeros((B, H), jnp.float32)
    w_ih_t = params["w_ih"].T
    w_hh_t = params["w_hh"].T
    b = params["b_ih"] + params["b_hh"]
    outs = []
    for t in range(T):
        gates = x[t] @ w_ih_t + h @ w_hh_t + b
        i_g = jax.nn.sigmoid(gates[:, 0 * H:1 * H])
        f_g = jax.nn.sigmoid(gates[:, 1 * H:2 * H])
        g_g = jnp.tanh(gates[:, 2 * H:3 * H])
        o_g = jax.nn.sigmoid(gates[:, 3 * H:4 * H])
        c = f_g * c + i_g * g_g
        h = o_g * jnp.tanh(c)
        outs.append(h @ params["w_out"].T + params["b_out"])
    return jnp.stack(outs, axis=0)


if __name__ == "__main__":
    seq_len, batch, input_size, hidden_size, output_size = 8, 2, 16, 32, 8

    key = jax.random.PRNGKey(0)
    k_x, k_p = jax.random.split(key)
    x = jax.random.normal(k_x, (seq_len, batch, input_size), jnp.float32)
    params = init_params(k_p, input_size, hidden_size, output_size)

    out = rnn_forward(x, params)
    jax.block_until_ready(out)

    ref = reference_forward(x, params)
    assert out.shape == (seq_len, batch, output_size)
    assert jnp.allclose(out, ref, atol=1e-5, rtol=1e-5)

    print("KERNEL_OK")
</pallas_src>

<mosaic_0001>
module attributes {stable_mosaic.version = 11 : i64} {
  func.func @_proj_kernel(%arg0: i32, %arg1: memref<64x16xf32, #tpu.memory_space<vmem>>, %arg2: memref<16x512xf32, #tpu.memory_space<vmem>>, %arg3: memref<1x512xf32, #tpu.memory_space<vmem>>, %arg4: memref<64x512xf32, #tpu.memory_space<vmem>>) attributes {dimension_semantics = [#tpu.dimension_semantics<parallel>], iteration_bounds = array<i64: 1>, scalar_prefetch = 0 : i64, scratch_operands = 0 : i64, tpu.core_type = #tpu.core_type<tc>, window_params = [{transform_indices = @transform_0, window_bounds = array<i64: 64, 16>}, {pipeline_mode = #tpu.pipeline_mode<synchronous>, transform_indices = @transform_1, window_bounds = array<i64: 16, 512>}, {pipeline_mode = #tpu.pipeline_mode<synchronous>, transform_indices = @transform_2, window_bounds = array<i64: 1, 512>}, {transform_indices = @transform_3, window_bounds = array<i64: 64, 512>}]} {
    %c0 = arith.constant 0 : index
    %c0_0 = arith.constant 0 : index
    %0 = vector.load %arg1[%c0, %c0_0] : memref<64x16xf32, #tpu.memory_space<vmem>>, vector<64x16xf32>
    %c0_1 = arith.constant 0 : index
    %c0_2 = arith.constant 0 : index
    %1 = vector.load %arg2[%c0_1, %c0_2] : memref<16x512xf32, #tpu.memory_space<vmem>>, vector<16x512xf32>
    %cst = arith.constant dense<0.000000e+00> : vector<64x512xf32>
    %2 = tpu.matmul %0, %1, %cst {dimension_numbers = #tpu.dot_dimension_numbers<[1], [0], [0], [1], [0, 0, 1, 1], [], []>} : vector<64x16xf32>, vector<16x512xf32>, vector<64x512xf32> -> vector<64x512xf32>
    %c0_3 = arith.constant 0 : index
    %c0_4 = arith.constant 0 : index
    %3 = vector.load %arg3[%c0_3, %c0_4] : memref<1x512xf32, #tpu.memory_space<vmem>>, vector<1x512xf32>
    %4 = vector.broadcast %3 : vector<1x512xf32> to vector<64x512xf32>
    %5 = arith.addf %2, %4 : vector<64x512xf32>
    %c0_5 = arith.constant 0 : index
    %c0_6 = arith.constant 0 : index
    %6 = vector.load %arg4[%c0_5, %c0_6] : memref<64x512xf32, #tpu.memory_space<vmem>>, vector<64x512xf32>
    tpu.vector_store %arg4[%c0_5, %c0_6], %5 {strides = array<i32>} : memref<64x512xf32, #tpu.memory_space<vmem>>, vector<64x512xf32>,
    return
  }
  func.func @transform_0(%arg0: i32) -> (i32, i32) {
    %c0_i32 = arith.constant 0 : i32
    %c0_i32_0 = arith.constant 0 : i32
    return %arg0, %c0_i32 : i32, i32
  }
  func.func @transform_1(%arg0: i32) -> (i32, i32) {
    %c0_i32 = arith.constant 0 : i32
    %c0_i32_0 = arith.constant 0 : i32
    %c0_i32_1 = arith.constant 0 : i32
    return %c0_i32, %c0_i32_0 : i32, i32
  }
  func.func @transform_2(%arg0: i32) -> (i32, i32) {
    %c0_i32 = arith.constant 0 : i32
    %c0_i32_0 = arith.constant 0 : i32
    %c0_i32_1 = arith.constant 0 : i32
    return %c0_i32, %c0_i32_0 : i32, i32
  }
  func.func @transform_3(%arg0: i32) -> (i32, i32) {
    %c0_i32 = arith.constant 0 : i32
    %c0_i32_0 = arith.constant 0 : i32
    return %arg0, %c0_i32 : i32, i32
  }
}

</mosaic_0001>

<bundles_post_ra>
// kernel: tpu_custom_call.1
= control target key start
LH: loop header
LB: loop body
LE: loop exit
PB: predicated region body
PF: predicated region fallthrough
CT: control target
= control target key end

     0   :  { %vm53_vm0 = vcmask 130048   ;;  %v394_v9 = vmov 0.0   ;;  %s528_s0 = inlined_call_operand.vmem [shape: f32[64,16], index: 0, kind: input, shape index: {}]   ;;  %s529_s1 = inlined_call_operand.vmem [shape: f32[16,512], index: 1, kind: input, shape index: {}]   ;;  %s530_s2 = inlined_call_operand.vmem [shape: f32[1,512], index: 2, kind: input, shape index: {}]   ;;  %s531_s3 = inlined_call_operand.hbm [shape: f32[64,512], index: 3, kind: output, shape index: {}]  }
   0x1   :  { %v28_v0 = vld [vmem:[%s529_s1 + $0x28] sm:$0xff]  ;;  %v30_v1 = vld [vmem:[%s529_s1 + $0x38] sm:$0xff]  ;;  %v27_v2 = vld [vmem:[%s529_s1 + $0x20] sm:$0xff]  ;;  %142 = vmatprep.mubr.f32.mxu0 %v394_v9  ;;  %255 = vmatprep.mubr.f32.mxu1 %v394_v9 }
   0x2   :  { %106 = vmatprep.subr.mxu0 %v28_v0  ;;  %219 = vmatprep.subr.mxu1 %v30_v1  ;;  %v29_v3 = vld [vmem:[%s529_s1 + $0x30] sm:$0xff]  ;;  %v24_v4 = vld [vmem:[%s529_s1 + $0x8] sm:$0xff]  ;;  %v26_v5 = vld [vmem:[%s529_s1 + $0x18] sm:$0xff] }
   0x3   :  { %107 = vmatpush1.msra.mxu0 %v27_v2  ;;  %220 = vmatpush1.msra.mxu1 %v29_v3  ;;  %v23_v6 = vld [vmem:[%s529_s1] sm:$0xff]  ;;  %v25_v7 = vld [vmem:[%s529_s1 + $0x10] sm:$0xff] }
   0x4   :  { %108 = vmatprep.subr.mxu0 %v24_v4  ;;  %221 = vmatprep.subr.mxu1 %v26_v5  ;;  %v15_v8 = vld [vmem:[%s528_s0] sm:$0xff] }
   0x5   :  { %109 = vmatpush1.msra.mxu0 %v23_v6  ;;  %222 = vmatpush1.msra.mxu1 %v25_v7 }
   0x6   :  { %8 = vsyncpa [#allocation3], 0  ;;  %352 = vmatmul.mubr.msk.f32.vlgmr.msra.gmra.mxu0 %vm53_vm0, %v15_v8  ;;  %360 = vmatmul.mubr.msk.f32.vlgmr.msra.gmra.mxu1 %vm53_vm0, %v15_v8  ;;  %v16_v10 = vld [vmem:[%s528_s0 + $0x8] sm:$0xff]  ;;  %v17_v11 = vld [vmem:[%s528_s0 + $0x10] sm:$0xff]  ;;  %v33_v17 = vlaneseq }
   0x7   :  { %148 = vmatprep.mubr.f32.mxu0 %v394_v9  ;;  %261 = vmatprep.mubr.f32.mxu1 %v394_v9  ;;  %v18_v12 = vld [vmem:[%s528_s0 + $0x18] sm:$0xff]  ;;  %v19_v13 = vld [vmem:[%s528_s0 + $0x20] sm:$0xff]  ;;  %v20_v14 = vld [vmem:[%s528_s0 + $0x28] sm:$0xff] }
   0x8   :  { %v21_v15 = vld [vmem:[%s528_s0 + $0x30] sm:$0xff]  ;;  %v22_v16 = vld [vmem:[%s528_s0 + $0x38] sm:$0xff]  ;;  %v34_v18 = vshrl.u32 %v33_v17, 7  ;;  %v31_v21 = vld [vmem:[%s530_s2] sm:$0xf]  ;;  %s395_s0 = smov [#allocation2]  }
   0x9   :  { %s341_s2 = sshll.u32 %s395_s0, 4  ;;  %s342_s2 = int_to_ptr.vmem [resolvable:$true] %s341_s2 }
   0xa   :  { %353 = vmatmul.mubr.msk.f32.gmra.mxu0 %vm53_vm0, %v16_v10  ;;  %361 = vmatmul.mubr.msk.f32.gmra.mxu1 %vm53_vm0, %v16_v10  ;;  %v35_v19 = vsub.s32 0, %v34_v18  ;;  %v43_v20 = vsub.s32 2, %v34_v18  ;;  %v39_v22 = vsub.s32 1, %v34_v18  ;;  %v47_v23 = vsub.s32 3, %v34_v18  ;;  %s372_s18 = scalar_lea.vmem %s342_s2, 4096  ;;  %p377_p1 = scmp.lt.s32.totalorder %s342_s2, %s342_s2 }
   0xb   :  { %154 = vmatprep.mubr.f32.mxu0 %v394_v9  ;;  %267 = vmatprep.mubr.f32.mxu1 %v394_v9  ;;  %p373_p0 = scmp.ne.s32.totalorder %s342_s2, %s372_s18  ;;  %p378_p2 = scmp.lt.s32.totalorder %s372_s18, %s372_s18 }
   0xc   :  { %v485_v24 = vrot.slane %v31_v21, %v35_v19  ;;  %v487_v25 = vrot.slane %v31_v21, %v43_v20  ;;  %v489_v26 = vrot.slane %v31_v21, %v39_v22  ;;  %v491_v27 = vrot.slane %v31_v21, %v47_v23 }
   0xd   :  { %p379_p3 = por %p378_p2, %p377_p1 }
   0xe   :  { %354 = vmatmul.mubr.msk.f32.gmra.mxu0 %vm53_vm0, %v17_v11  ;;  %362 = vmatmul.mubr.msk.f32.gmra.mxu1 %vm53_vm0, %v17_v11 }
   0xf   :  { %160 = vmatprep.mubr.f32.mxu0 %v394_v9  ;;  %273 = vmatprep.mubr.f32.mxu1 %v394_v9  ;;  %p380_p4 = pnand %p379_p3, %p373_p0 }
  0x12   :  { %355 = vmatmul.mubr.msk.f32.gmra.mxu0 %vm53_vm0, %v18_v12  ;;  %363 = vmatmul.mubr.msk.f32.gmra.mxu1 %vm53_vm0, %v18_v12 }
  0x13   :  { %166 = vmatprep.mubr.f32.mxu0 %v394_v9  ;;  %279 = vmatprep.mubr.f32.mxu1 %v394_v9 }
  0x16   :  { %356 = vmatmul.mubr.msk.f32.gmra.mxu0 %vm53_vm0, %v19_v13  ;;  %364 = vmatmul.mubr.msk.f32.gmra.mxu1 %vm53_vm0, %v19_v13 }
  0x17   :  { %172 = vmatprep.mubr.f32.mxu0 %v394_v9  ;;  %285 = vmatprep.mubr.f32.mxu1 %v394_v9 }
  0x1a   :  { %357 = vmatmul.mubr.msk.f32.gmra.mxu0 %vm53_vm0, %v20_v14  ;;  %365 = vmatmul.mubr.msk.f32.gmra.mxu1 %vm53_vm0, %v20_v14 }
  0x1b   :  { %178 = vmatprep.mubr.f32.mxu0 %v394_v9  ;;  %291 = vmatprep.mubr.f32.mxu1 %v394_v9 }
  0x1e   :  { %358 = vmatmul.mubr.msk.f32.gmra.mxu0 %vm53_vm0, %v21_v15  ;;  %366 = vmatmul.mubr.msk.f32.gmra.mxu1 %vm53_vm0, %v21_v15 }
  0x1f   :  { %184 = vmatprep.mubr.f32.mxu0 %v394_v9  ;;  %297 = vmatprep.mubr.f32.mxu1 %v394_v9 }
  0x22   :  { %359 = vmatmul.mubr.msk.f32.gmra.mxu0 %vm53_vm0, %v22_v16  ;;  %367 = vmatmul.mubr.msk.f32.gmra.mxu1 %vm53_vm0, %v22_v16 }
  0xc6   :  { %v144_v28 = vpop.f32.mrf.mxu0  ;;  %v257_v29 = vpop.f32.mrf.mxu1 }
  0xc7   :  { %v145_v30 = vadd.f32 %v144_v28, %v485_v24  ;;  %v258_v31 = vadd.f32 %v257_v29, %v487_v25 }
  0xc8   :  { %v146_v32 = vpop.f32.mrf.mxu0  ;;  %v259_v33 = vpop.f32.mrf.mxu1 }
  0xc9   :  { %304 = vst [vmem:[#allocation2] sm:$0xff] %v145_v30  ;;  %306 = vst [vmem:[#allocation2 + $0x10] sm:$0xff] %v258_v31  ;;  %v147_v34 = vadd.f32 %v146_v32, %v489_v26  ;;  %v260_v35 = vadd.f32 %v259_v33, %v491_v27 }
  0xca   :  { %v150_v36 = vpop.f32.mrf.mxu0  ;;  %v263_v37 = vpop.f32.mrf.mxu1 }
  0xcb   :  { %305 = vst [vmem:[#allocation2 + $0x8] sm:$0xff] %v147_v34  ;;  %307 = vst [vmem:[#allocation2 + $0x18] sm:$0xff] %v260_v35  ;;  %v151_v38 = vadd.f32 %v150_v36, %v485_v24  ;;  %v264_v39 = vadd.f32 %v263_v37, %v487_v25 }
  0xcc   :  { %v152_v40 = vpop.f32.mrf.mxu0  ;;  %v265_v41 = vpop.f32.mrf.mxu1 }
  0xcd   :  { %308 = vst [vmem:[#allocation2 + $0x20] sm:$0xff] %v151_v38  ;;  %310 = vst [vmem:[#allocation2 + $0x30] sm:$0xff] %v264_v39  ;;  %v153_v42 = vadd.f32 %v152_v40, %v489_v26  ;;  %v266_v43 = vadd.f32 %v265_v41, %v491_v27 }
  0xce   :  { %v156_v44 = vpop.f32.mrf.mxu0  ;;  %v269_v45 = vpop.f32.mrf.mxu1 }
  0xcf   :  { %309 = vst [vmem:[#allocation2 + $0x28] sm:$0xff] %v153_v42  ;;  %311 = vst [vmem:[#allocation2 + $0x38] sm:$0xff] %v266_v43  ;;  %v157_v46 = vadd.f32 %v156_v44, %v485_v24  ;;  %v270_v47 = vadd.f32 %v269_v45, %v487_v25 }
  0xd0   :  { %v158_v48 = vpop.f32.mrf.mxu0  ;;  %v271_v49 = vpop.f32.mrf.mxu1 }
  0xd1   :  { %312 = vst [vmem:[#allocation2 + $0x40] sm:$0xff] %v157_v46  ;;  %314 = vst [vmem:[#allocation2 + $0x50] sm:$0xff] %v270_v47  ;;  %v159_v50 = vadd.f32 %v158_v48, %v489_v26  ;;  %v272_v51 = vadd.f32 %v271_v49, %v491_v27 }
  0xd2   :  { %v162_v52 = vpop.f32.mrf.mxu0  ;;  %v275_v53 = vpop.f32.mrf.mxu1 }
  0xd3   :  { %313 = vst [vmem:[#allocation2 + $0x48] sm:$0xff] %v159_v50  ;;  %315 = vst [vmem:[#allocation2 + $0x58] sm:$0xff] %v272_v51  ;;  %v163_v54 = vadd.f32 %v162_v52, %v485_v24  ;;  %v276_v55 = vadd.f32 %v275_v53, %v487_v25 }
  0xd4   :  { %v164_v56 = vpop.f32.mrf.mxu0  ;;  %v277_v57 = vpop.f32.mrf.mxu1 }
  0xd5   :  { %316 = vst [vmem:[#allocation2 + $0x60] sm:$0xff] %v163_v54  ;;  %318 = vst [vmem:[#allocation2 + $0x70] sm:$0xff] %v276_v55  ;;  %v165_v58 = vadd.f32 %v164_v56, %v489_v26  ;;  %v278_v59 = vadd.f32 %v277_v57, %v491_v27 }
  0xd6   :  { %v168_v60 = vpop.f32.mrf.mxu0  ;;  %v281_v61 = vpop.f32.mrf.mxu1 }
  0xd7   :  { %317 = vst [vmem:[#allocation2 + $0x68] sm:$0xff] %v165_v58  ;;  %319 = vst [vmem:[#allocation2 + $0x78] sm:$0xff] %v278_v59  ;;  %v169_v62 = vadd.f32 %v168_v60, %v485_v24  ;;  %v282_v63 = vadd.f32 %v281_v61, %v487_v25 }
  0xd8   :  { %v170_v0 = vpop.f32.mrf.mxu0  ;;  %v283_v1 = vpop.f32.mrf.mxu1 }
  0xd9   :  { %320 = vst [vmem:[#allocation2 + $0x80] sm:$0xff] %v169_v62  ;;  %322 = vst [vmem:[#allocation2 + $0x90] sm:$0xff] %v282_v63  ;;  %v171_v2 = vadd.f32 %v170_v0, %v489_v26  ;;  %v284_v3 = vadd.f32 %v283_v1, %v491_v27 }
  0xda   :  { %v174_v4 = vpop.f32.mrf.mxu0  ;;  %v287_v5 = vpop.f32.mrf.mxu1 }
  0xdb   :  { %321 = vst [vmem:[#allocation2 + $0x88] sm:$0xff] %v171_v2  ;;  %323 = vst [vmem:[#allocation2 + $0x98] sm:$0xff] %v284_v3  ;;  %v175_v6 = vadd.f32 %v174_v4, %v485_v24  ;;  %v288_v7 = vadd.f32 %v287_v5, %v487_v25 }
  0xdc   :  { %v176_v8 = vpop.f32.mrf.mxu0  ;;  %v289_v9 = vpop.f32.mrf.mxu1 }
  0xdd   :  { %324 = vst [vmem:[#allocation2 + $0xa0] sm:$0xff] %v175_v6  ;;  %326 = vst [vmem:[#allocation2 + $0xb0] sm:$0xff] %v288_v7  ;;  %v177_v10 = vadd.f32 %v176_v8, %v489_v26  ;;  %v290_v11 = vadd.f32 %v289_v9, %v491_v27 }
  0xde   :  { %v180_v12 = vpop.f32.mrf.mxu0  ;;  %v293_v13 = vpop.f32.mrf.mxu1 }
  0xdf   :  { %325 = vst [vmem:[#allocation2 + $0xa8] sm:$0xff] %v177_v10  ;;  %327 = vst [vmem:[#allocation2 + $0xb8] sm:$0xff] %v290_v11  ;;  %v181_v14 = vadd.f32 %v180_v12, %v485_v24  ;;  %v294_v15 = vadd.f32 %v293_v13, %v487_v25 }
  0xe0   :  { %v182_v16 = vpop.f32.mrf.mxu0  ;;  %v295_v17 = vpop.f32.mrf.mxu1 }
  0xe1   :  { %328 = vst [vmem:[#allocation2 + $0xc0] sm:$0xff] %v181_v14  ;;  %330 = vst [vmem:[#allocation2 + $0xd0] sm:$0xff] %v294_v15  ;;  %v183_v18 = vadd.f32 %v182_v16, %v489_v26  ;;  %v296_v19 = vadd.f32 %v295_v17, %v491_v27 }
  0xe2   :  { %v186_v20 = vpop.f32.mrf.mxu0  ;;  %v299_v21 = vpop.f32.mrf.mxu1 }
  0xe3   :  { %329 = vst [vmem:[#allocation2 + $0xc8] sm:$0xff] %v183_v18  ;;  %331 = vst [vmem:[#allocation2 + $0xd8] sm:$0xff] %v296_v19  ;;  %v187_v22 = vadd.f32 %v186_v20, %v485_v24  ;;  %v300_v23 = vadd.f32 %v299_v21, %v487_v25 }
  0xe4   :  { %v188_v28 = vpop.f32.mrf.mxu0  ;;  %v301_v29 = vpop.f32.mrf.mxu1 }
  0xe5   :  { %332 = vst [vmem:[#allocation2 + $0xe0] sm:$0xff] %v187_v22  ;;  %334 = vst [vmem:[#allocation2 + $0xf0] sm:$0xff] %v300_v23  ;;  %v189_v30 = vadd.f32 %v188_v28, %v489_v26  ;;  %v302_v31 = vadd.f32 %v301_v29, %v491_v27 }
  0xe7   :  { %333 = vst [vmem:[#allocation2 + $0xe8] sm:$0xff] %v189_v30  ;;  %335 = vst [vmem:[#allocation2 + $0xf8] sm:$0xff] %v302_v31 }
  0xe8   :  { %383 = shalt.err (!%p380_p4)
}
  0xe9   :  { %s396_s19 = smov 512   ;;  %s397_s20 = smov 32  }
  0xea   :  { %347 = dma.vmem_to_hbm [thread:$0]  %s342_s2, 4096, %s531_s3, [#allocation3], %s396_s19, %s396_s19, %s397_s20  }
  0xeb   :  { %392 = dma.done.wait [#allocation3], 4096  }
  0xec   :  { %393 = vsyncadd [#allocation3], 4294963200 }
  0xed   :  { %351 = vsyncpa [#allocation3], 1 }

</bundles_post_ra>
